<compile_context>
chip_gen: v7x
topology: tpu7x:2x2x1
jax: 0.10.0
libtpu: 0.0.40
codegen_flags: <defaults>
</compile_context>

<pallas_src>
import jax
import jax.numpy as jnp
from jax import lax
from jax.experimental import pallas as pl
from jax.experimental.pallas import tpu as pltpu

SEQ = 50      # sequence length (fixed by the pe buffer)
DIM = 32      # d_model
VOCAB = 39    # embedding vocab size

LANES = 128
PACK = LANES // DIM          # 4 tokens packed per 128-lane output row
VF = VOCAB + SEQ             # fused table height: token rows + position rows = 89
VF_PAD = 128                 # per-slot table height padded to a lane multiple
ROW_TILE = 8                 # packed output rows per grid step (sublane aligned)


def pos_embed_kernel(cols_ref, table_ref, out_ref):
    """One grid step = ROW_TILE packed output rows (ROW_TILE*PACK tokens).

    cols_ref : (ROW_TILE, 2*PACK) int32  fused one-hot column indices
               (token column and position column for each of the PACK slots)
    table_ref: (PACK*VF_PAD, PACK*DIM) f32  block-diagonal [embedding ; pe] table
    out_ref  : (ROW_TILE, PACK*DIM) f32  lane-dense packed output
    """
    cols = cols_ref[...]                                   # (TR, 2*PACK)
    tr, nc = cols.shape
    kf = table_ref.shape[0]

    # Build the combined one-hot with 2*PACK (=8) static, unrolled lane compares.
    lane_iota = lax.broadcasted_iota(jnp.int32, (tr, kf), 1)
    onehot = jnp.zeros((tr, kf), jnp.float32)
    for j in range(nc):                                    # static Python unroll
        onehot = onehot + (lane_iota == cols[:, j:j + 1]).astype(jnp.float32)

    # Single 2-D MXU matmul: embedding gather + positional add in one contraction.
    out_ref[...] = jnp.dot(onehot, table_ref[...],
                           preferred_element_type=jnp.float32)


def position_embedding(ids, emb_table, pe2d):
    """ids: (B, S) int32, emb_table: (V, D) f32, pe2d: (S, D) f32 -> (B, S, D) f32."""
    B, S = ids.shape
    V, D = emb_table.shape
    assert (S, D) == pe2d.shape and V == VOCAB and S == SEQ and D == DIM

    # ---------- wrapper-side layout plumbing (cheap integer work) ----------
    n_tok = B * S
    rows = pl.cdiv(n_tok, PACK)
    rows_pad = pl.cdiv(rows, ROW_TILE) * ROW_TILE
    n_pad = rows_pad * PACK
    pad = n_pad - n_tok

    flat_ids = jnp.pad(ids.reshape(-1).astype(jnp.int32), (0, pad))
    flat_pos = jnp.pad(jnp.arange(n_tok, dtype=jnp.int32) % S, (0, pad))

    slot_off = (jnp.arange(n_pad, dtype=jnp.int32) % PACK) * VF_PAD
    tok_cols = (flat_ids + slot_off).reshape(rows_pad, PACK)
    pos_cols = (flat_pos + V + slot_off).reshape(rows_pad, PACK)
    cols = jnp.concatenate([tok_cols, pos_cols], axis=1)       # (rows_pad, 2*PACK)

    # Fused [embedding ; pe] table, block-diagonal so slot k writes lanes k*D..(k+1)*D.
    fused = jnp.zeros((VF_PAD, D), jnp.float32)
    fused = fused.at[:V].set(emb_table).at[V:V + S].set(pe2d)
    table = jnp.kron(jnp.eye(PACK, dtype=jnp.float32), fused)  # (PACK*VF_PAD, PACK*D)

    packed = pl.pallas_call(
        pos_embed_kernel,
        out_shape=jax.ShapeDtypeStruct((rows_pad, PACK * D), jnp.float32),
        grid=(rows_pad // ROW_TILE,),
        in_specs=[
            pl.BlockSpec((ROW_TILE, 2 * PACK), lambda i: (i, 0)),
            pl.BlockSpec((PACK * VF_PAD, PACK * D), lambda i: (0, 0)),  # resident table
        ],
        out_specs=pl.BlockSpec((ROW_TILE, PACK * D), lambda i: (i, 0)),
        compiler_params=pltpu.CompilerParams(
            dimension_semantics=("parallel",)),
    )(cols, table)

    # Packed layout equals row-major (token, feature): the reshape is free.
    return packed.reshape(-1)[: n_tok * D].reshape(B, S, D)


def make_pe(seq=SEQ, d_model=DIM):
    # Matches the PyTorch loop exactly: fenmu = 10000 ** (j / d_model),
    # sin for even j, cos for odd j (uses j directly, not 2*(j//2)).
    pos = jnp.arange(seq, dtype=jnp.float32)[:, None]           # (S, 1)
    j = jnp.arange(d_model, dtype=jnp.float32)[None, :]         # (1, D)
    angle = pos / (10000.0 ** (j / d_model))                    # (S, D)
    even = (jnp.arange(d_model)[None, :] % 2) == 0
    return jnp.where(even, jnp.sin(angle), jnp.cos(angle)).astype(jnp.float32)


if __name__ == "__main__":
    key = jax.random.PRNGKey(0)
    k_ids, k_emb = jax.random.split(key)

    B = 2
    x = jax.random.randint(k_ids, (B, SEQ), 0, VOCAB, dtype=jnp.int32)      # token ids
    emb_table = 0.1 * jax.random.normal(k_emb, (VOCAB, DIM), dtype=jnp.float32)
    pe2d = make_pe()                                                        # (S, D)

    out = position_embedding(x, emb_table, pe2d)
    out = jax.block_until_ready(out)

    # Pure-JAX reference (embedding lookup + positional add).
    ref = jnp.take(emb_table, x, axis=0) + pe2d[None]
    assert out.shape == (B, SEQ, DIM)
    assert jnp.allclose(out, ref, atol=1e-5, rtol=1e-5)

    print("KERNEL_OK")
</pallas_src>

<mosaic_0001>
module attributes {stable_mosaic.version = 11 : i64} {
  func.func @pos_embed_kernel(%arg0: i32, %arg1: memref<8x8xi32, #tpu.memory_space<vmem>>, %arg2: memref<512x128xf32, #tpu.memory_space<vmem>>, %arg3: memref<8x128xf32, #tpu.memory_space<vmem>>) attributes {dimension_semantics = [#tpu.dimension_semantics<parallel>], iteration_bounds = array<i64: 4>, scalar_prefetch = 0 : i64, scratch_operands = 0 : i64, tpu.core_type = #tpu.core_type<tc>, window_params = [{transform_indices = @transform_0, window_bounds = array<i64: 8, 8>}, {pipeline_mode = #tpu.pipeline_mode<synchronous>, transform_indices = @transform_1, window_bounds = array<i64: 512, 128>}, {transform_indices = @transform_2, window_bounds = array<i64: 8, 128>}]} {
    %c0 = arith.constant 0 : index
    %c0_0 = arith.constant 0 : index
    %0 = vector.load %arg1[%c0, %c0_0] : memref<8x8xi32, #tpu.memory_space<vmem>>, vector<8x8xi32>
    %1 = tpu.iota {dimensions = array<i32: 1>} : vector<8x512xi32>
    %cst = arith.constant 0.000000e+00 : f32
    %2 = vector.broadcast %cst : f32 to vector<8x512xf32>
    %3 = vector.extract_strided_slice %0 {offsets = [0, 0], sizes = [8, 1], strides = [1, 1]} : vector<8x8xi32> to vector<8x1xi32>
    %4 = vector.broadcast %3 : vector<8x1xi32> to vector<8x512xi32>
    %5 = arith.cmpi eq, %1, %4 : vector<8x512xi32>
    %6 = arith.extui %5 : vector<8x512xi1> to vector<8x512xi32>
    %7 = arith.sitofp %6 : vector<8x512xi32> to vector<8x512xf32>
    %8 = arith.addf %2, %7 : vector<8x512xf32>
    %9 = vector.extract_strided_slice %0 {offsets = [0, 1], sizes = [8, 1], strides = [1, 1]} : vector<8x8xi32> to vector<8x1xi32>
    %10 = vector.broadcast %9 : vector<8x1xi32> to vector<8x512xi32>
    %11 = arith.cmpi eq, %1, %10 : vector<8x512xi32>
    %12 = arith.extui %11 : vector<8x512xi1> to vector<8x512xi32>
    %13 = arith.sitofp %12 : vector<8x512xi32> to vector<8x512xf32>
    %14 = arith.addf %8, %13 : vector<8x512xf32>
    %15 = vector.extract_strided_slice %0 {offsets = [0, 2], sizes = [8, 1], strides = [1, 1]} : vector<8x8xi32> to vector<8x1xi32>
    %16 = vector.broadcast %15 : vector<8x1xi32> to vector<8x512xi32>
    %17 = arith.cmpi eq, %1, %16 : vector<8x512xi32>
    %18 = arith.extui %17 : vector<8x512xi1> to vector<8x512xi32>
    %19 = arith.sitofp %18 : vector<8x512xi32> to vector<8x512xf32>
    %20 = arith.addf %14, %19 : vector<8x512xf32>
    %21 = vector.extract_strided_slice %0 {offsets = [0, 3], sizes = [8, 1], strides = [1, 1]} : vector<8x8xi32> to vector<8x1xi32>
    %22 = vector.broadcast %21 : vector<8x1xi32> to vector<8x512xi32>
    %23 = arith.cmpi eq, %1, %22 : vector<8x512xi32>
    %24 = arith.extui %23 : vector<8x512xi1> to vector<8x512xi32>
    %25 = arith.sitofp %24 : vector<8x512xi32> to vector<8x512xf32>
    %26 = arith.addf %20, %25 : vector<8x512xf32>
    %27 = vector.extract_strided_slice %0 {offsets = [0, 4], sizes = [8, 1], strides = [1, 1]} : vector<8x8xi32> to vector<8x1xi32>
    %28 = vector.broadcast %27 : vector<8x1xi32> to vector<8x512xi32>
    %29 = arith.cmpi eq, %1, %28 : vector<8x512xi32>
    %30 = arith.extui %29 : vector<8x512xi1> to vector<8x512xi32>
    %31 = arith.sitofp %30 : vector<8x512xi32> to vector<8x512xf32>
    %32 = arith.addf %26, %31 : vector<8x512xf32>
    %33 = vector.extract_strided_slice %0 {offsets = [0, 5], sizes = [8, 1], strides = [1, 1]} : vector<8x8xi32> to vector<8x1xi32>
    %34 = vector.broadcast %33 : vector<8x1xi32> to vector<8x512xi32>
    %35 = arith.cmpi eq, %1, %34 : vector<8x512xi32>
    %36 = arith.extui %35 : vector<8x512xi1> to vector<8x512xi32>
    %37 = arith.sitofp %36 : vector<8x512xi32> to vector<8x512xf32>
    %38 = arith.addf %32, %37 : vector<8x512xf32>
    %39 = vector.extract_strided_slice %0 {offsets = [0, 6], sizes = [8, 1], strides = [1, 1]} : vector<8x8xi32> to vector<8x1xi32>
    %40 = vector.broadcast %39 : vector<8x1xi32> to vector<8x512xi32>
    %41 = arith.cmpi eq, %1, %40 : vector<8x512xi32>
    %42 = arith.extui %41 : vector<8x512xi1> to vector<8x512xi32>
    %43 = arith.sitofp %42 : vector<8x512xi32> to vector<8x512xf32>
    %44 = arith.addf %38, %43 : vector<8x512xf32>
    %45 = vector.extract_strided_slice %0 {offsets = [0, 7], sizes = [8, 1], strides = [1, 1]} : vector<8x8xi32> to vector<8x1xi32>
    %46 = vector.broadcast %45 : vector<8x1xi32> to vector<8x512xi32>
    %47 = arith.cmpi eq, %1, %46 : vector<8x512xi32>
    %48 = arith.extui %47 : vector<8x512xi1> to vector<8x512xi32>
    %49 = arith.sitofp %48 : vector<8x512xi32> to vector<8x512xf32>
    %50 = arith.addf %44, %49 : vector<8x512xf32>
    %c0_1 = arith.constant 0 : index
    %c0_2 = arith.constant 0 : index
    %51 = vector.load %arg2[%c0_1, %c0_2] : memref<512x128xf32, #tpu.memory_space<vmem>>, vector<512x128xf32>
    %cst_3 = arith.constant dense<0.000000e+00> : vector<8x128xf32>
    %52 = tpu.matmul %50, %51, %cst_3 {dimension_numbers = #tpu.dot_dimension_numbers<[1], [0], [0], [1], [0, 0, 1, 1], [], []>} : vector<8x512xf32>, vector<512x128xf32>, vector<8x128xf32> -> vector<8x128xf32>
    %c0_4 = arith.constant 0 : index
    %c0_5 = arith.constant 0 : index
    %53 = vector.load %arg3[%c0_4, %c0_5] : memref<8x128xf32, #tpu.memory_space<vmem>>, vector<8x128xf32>
    tpu.vector_store %arg3[%c0_4, %c0_5], %52 {strides = array<i32>} : memref<8x128xf32, #tpu.memory_space<vmem>>, vector<8x128xf32>,
    return
  }
  func.func @transform_0(%arg0: i32) -> (i32, i32) {
    %c0_i32 = arith.constant 0 : i32
    %c0_i32_0 = arith.constant 0 : i32
    return %arg0, %c0_i32 : i32, i32
  }
  func.func @transform_1(%arg0: i32) -> (i32, i32) {
    %c0_i32 = arith.constant 0 : i32
    %c0_i32_0 = arith.constant 0 : i32
    %c0_i32_1 = arith.constant 0 : i32
    return %c0_i32, %c0_i32_0 : i32, i32
  }
  func.func @transform_2(%arg0: i32) -> (i32, i32) {
    %c0_i32 = arith.constant 0 : i32
    %c0_i32_0 = arith.constant 0 : i32
    return %arg0, %c0_i32 : i32, i32
  }
}

</mosaic_0001>

<bundles_post_ra>
// kernel: tpu_custom_call.1
= control target key start
LH: loop header
LB: loop body
LE: loop exit
PB: predicated region body
PF: predicated region fallthrough
CT: control target
= control target key end

     0   :  { %7 = vsyncpa [#allocation3], 0  ;;  %s1204_s0 = inlined_call_operand.vmem [shape: s32[32,8], index: 0, kind: input, shape index: {}]   ;;  %s1205_s1 = inlined_call_operand.hbm [shape: f32[512,128], index: 1, kind: input, shape index: {}]   ;;  %s1206_s2 = inlined_call_operand.hbm [shape: f32[32,128], index: 2, kind: output, shape index: {}]  }
   0x1   :  { %8 = vsyncpa [#allocation4], 0 }
   0x2   :  { %10 = vsyncpa [#allocation4 + $0x1], 0  ;;  %s974_s9 = smov 0   ;;  %s976_s10 = smov 0  }
   0x3   :  { %s978_s11 = smov 0   ;;  %s980_s12 = smov 0  }
   0x4 LB: > { %s995_s13 = sadd.s32 4294967295, %s944_s12   ;;  %s602_s14 = sadd.s32 4294967294, %s944_s12   ;;  %s944_s12 = sphi %s980_s12, %s1222_s12   ;;  %s940_s11 = sphi %s978_s11, %s1221_s11   ;;  %s936_s10 = sphi %s976_s10, %s1220_s10   ;;  %s932_s9 = sphi %s974_s9, %s1219_s9  }
   0x5   : > { %s999_s15 = sadd.s32 1, %s944_s12   ;;  %s70_s16 = sadd.s32 1, %s940_s11 }
   0x6   : > { %s67_s17 = ssub.s32 %s944_s12, %s999_s15  ;;  %p80_p0 = scmp.ne.s32.totalorder %s940_s11, %s936_s10 }
   0x7   : > { %p68_p1 = scmp.eq.s32.totalorder %s67_s17, 0  ;;  %p81_p2 = scmp.eq.s32.totalorder %s995_s13, 3 }
   0x8   : > { %p86_p3 = scmp.ne.s32.totalorder %s936_s10, %s932_s9  ;;  %p87_p4 = scmp.eq.s32.totalorder %s602_s14, 3 }
   0x9   : > { %s1010_s18 = scalar_select %p68_p1, %s940_s11, %s70_s16  }
   0xa   : > { %p1012_p5 = por %p81_p2, %p80_p0  ;;  %p1016_p6 = por %p87_p4, %p86_p3 }
   0xb   : > { %p603_p7 = scmp.ge.s32.totalorder %s944_s12, 1  ;;  %p94_p8 = scmp.lt.s32.totalorder %s944_s12, 5 }
   0xc   : > { %s1210_s19 = scalar_select %p1012_p5, 1, 0 }
   0xd   : > { %s1211_s20 = scalar_select %p1016_p6, 1, 0 }
   0xe   : > { %p1207_p9 = scmp.eq.s32.totalorder %s995_s13, 0  ;;  %p1023_p10 = pnand %p603_p7, %p94_p8 }
   0xf   : > { %s946_s22 = smov [#allocation2]   ;;  %s850_s27 = scalar_lea.hbm %s1205_s1, 8192 }
  0x10   : > { %s1212_s21 = scalar_select %p1023_p10, 1, 0 }
  0x11   : > { %s106_s23 = sshll.u32 %s946_s22, 4  ;;  %p786_p11 = pneg %p1023_p10  ;;  %s107_s23 = int_to_ptr.vmem [resolvable:$true] %s106_s23 }
  0x12   : > { %p851_p13 = scmp.ne.s32.totalorder %s1205_s1, %s850_s27  ;;  %p857_p3 = scmp.lt.u32.totalorder %s850_s27, %s1205_s1 }
  0x13   : > { %p1031_p12 = pnand %p1207_p9, %p786_p11 }
  0x15   : > { %p852_p0 = pneg %p1031_p12 }
  0x17   : > { %p853_p1 = pnand %p852_p0, %p851_p13 }
  0x19   : > { %p854_p2 = pneg %p853_p1 }
  0x1b   : > { %p859_p4 = pnand %p857_p3, %p854_p2 }
  0x1d   : > { %862 = shalt.err (!%p859_p4)
}
  0x1e   : > { %s863_s4 = scalar_lea.vmem %s107_s23, 8192  ;;  %p871_p9 = scmp.lt.s32.totalorder %s107_s23, %s107_s23 }
  0x1f   : > { %p864_p7 = scmp.ne.s32.totalorder %s107_s23, %s863_s4  ;;  %p872_p6 = scmp.lt.s32.totalorder %s863_s4, %s863_s4 }
  0x21   : > { %p866_p8 = pnand %p864_p7, %p852_p0  ;;  %p873_p5 = por %p872_p6, %p871_p9 }
  0x23   : > { %p867_p11 = pneg %p866_p8 }
  0x25   : > { %p874_p10 = pnand %p873_p5, %p867_p11 }
  0x27   : > { %877 = shalt.err (!%p874_p10)
}
  0x28   : > { %s947_s5 = smov 128   ;;  %s948_s6 = smov 8  }
  0x29   : > { %789 = dma.hbm_to_vmem [thread:$0]  (!%p1031_p12), %s1205_s1, 8192, %s107_s23, [#allocation3], %s947_s5, %s947_s5, %s948_s6  }
  0x2a   : > { %p1214_p13 = scmp.ne.s32.totalorder %s1212_s21, 0 }
  0x2b   : > { %p1215_p1 = scmp.eq.s32.totalorder (!%p1214_p13), %s995_s13, 0 }
  0x2c   : > { %129 = sbr.rel (%p1214_p13) target bundleno = 447 (0x1bf), region = 28 }
  0x33   : > { %923 = dma.done.wait (%p1215_p1), [#allocation3], 8192   ;;  %p1216_p0 = pmov %p1215_p1 }
  0x34   : > { %p150_p5 = scmp.lt.s32.totalorder %s995_s13, 3  ;;  %v949_v0 = vmov 2   ;;  %v950_v1 = vmov 0   ;;  %v328_v3 = vld [vmem:[#allocation2 + $0x80] sm:$0xff]  ;;  %v329_v4 = vld [vmem:[#allocation2 + $0x88] sm:$0xff]  ;;  %v330_v15 = vld [vmem:[#allocation2 + $0x90] sm:$0xff] }
  0x35   : > { %925 = vsyncadd (%p1216_p0), [#allocation3], 4294959104  ;;  %843 = vset.pattern.permute.xlu1 %v949_v0  ;;  %841 = vset.pattern.permute.xlu0 %v950_v1  ;;  %v716_v5 = vpack.c.bf16 %v329_v4, %v328_v3  ;;  %v360_v6 = vld [vmem:[#allocation2 + $0x180] sm:$0xff]  ;;  %v361_v7 = vld [vmem:[#allocation2 + $0x188] sm:$0xff]  ;;  %v951_v22 = vmov 3   ;;  %v952_v23 = vmov 1  }
  0x36   : > { %s151_s14 = scalar_select %p150_p5, %s995_s13, 3  ;;  %v312_v8 = vld [vmem:[#allocation2] sm:$0xff]  ;;  %v748_v9 = vpack.c.bf16 %v361_v7, %v360_v6  ;;  %v313_v10 = vld [vmem:[#allocation2 + $0x8] sm:$0xff]  ;;  %v331_v16 = vld [vmem:[#allocation2 + $0x98] sm:$0xff]  ;;  %v953_v38 = vmov 4   ;;  %v954_v39 = vmov 5  }
  0x37   : > { %v344_v11 = vld [vmem:[#allocation2 + $0x100] sm:$0xff]  ;;  %v345_v12 = vld [vmem:[#allocation2 + $0x108] sm:$0xff]  ;;  %717 = vmatprep.subr.bf16.mxu0 %v716_v5  ;;  %v718_v13 = vpack.c.bf16 %v313_v10, %v312_v8  ;;  %v362_v17 = vld [vmem:[#allocation2 + $0x190] sm:$0xff]  ;;  %v720_v18 = vpack.c.bf16 %v331_v16, %v330_v15  ;;  %v955_v54 = vmov 6   ;;  %v956_v58 = vmov 7   ;;  %s147_s23 = sand.u32 1, %s936_s10  }
  0x38   : > { %s609_s16 = sshll.u32 %s151_s14, 3  ;;  %v750_v14 = vpack.c.bf16 %v345_v12, %v344_v11  ;;  %749 = vmatprep.subr.bf16.mxu1 %v748_v9  ;;  %v363_v19 = vld [vmem:[#allocation2 + $0x198] sm:$0xff]  ;;  %v314_v20 = vld [vmem:[#allocation2 + $0x10] sm:$0xff]  ;;  %v332_v27 = vld [vmem:[#allocation2 + $0xa0] sm:$0xff]  ;;  %s608_s24 = sshll.u32 %s147_s23, 3 }
  0x39   : > { %s153_s21 = scalar_lea.vmem %s1204_s0, %s609_s16  ;;  %v315_v21 = vld [vmem:[#allocation2 + $0x18] sm:$0xff]  ;;  %v752_v24 = vpack.c.bf16 %v363_v19, %v362_v17  ;;  %v346_v25 = vld [vmem:[#allocation2 + $0x110] sm:$0xff]  ;;  %v333_v28 = vld [vmem:[#allocation2 + $0xa8] sm:$0xff]  ;;  %719 = vmatpush3.bf16.msra.mxu0 %v718_v13  ;;  %s643_s25 = sshll.u32 %s995_s13, 7 }
  0x3a   : > { %v1062_v2 = vld [vmem:[%s153_s21] sm:$0xff]  ;;  %v347_v26 = vld [vmem:[#allocation2 + $0x118] sm:$0xff]  ;;  %v365_v30 = vld [vmem:[#allocation2 + $0x1a8] sm:$0xff]  ;;  %751 = vmatpush3.bf16.msra.mxu1 %v750_v14  ;;  %721 = vmatprep.subr.bf16.mxu0 %v720_v18  ;;  %v722_v31 = vpack.c.bf16 %v315_v21, %v314_v20  ;;  %v724_v33 = vpack.c.bf16 %v333_v28, %v332_v27  ;;  %s149_s26 = scalar_lea.vmem [#allocation5], %s608_s24  ;;  %s1162_s30 = scalar_lea.hbm %s1206_s2, %s643_s25 }
  0x3b   : > { %199 = vperm.xlu1 %843, %v1062_v2   ;;  %161 = vperm.xlu0 %841, %v1062_v2   ;;  %v364_v29 = vld [vmem:[#allocation2 + $0x1a0] sm:$0xff]  ;;  %v754_v32 = vpack.c.bf16 %v347_v26, %v346_v25  ;;  %v317_v36 = vld [vmem:[#allocation2 + $0x28] sm:$0xff]  ;;  %v334_v41 = vld [vmem:[#allocation2 + $0xb0] sm:$0xff]  ;;  %s531_s27 = sshll.u32 %s149_s26, 4  ;;  %s518_s3 = scalar_lea.sflag [#allocation4], %s147_s23  ;;  %s1164_s27 = int_to_ptr.vmem [resolvable:$true] %s531_s27 }
  0x3c   : > { %753 = vmatprep.subr.bf16.mxu1 %v752_v24  ;;  %v756_v34 = vpack.c.bf16 %v365_v30, %v364_v29  ;;  %v316_v35 = vld [vmem:[#allocation2 + $0x20] sm:$0xff]  ;;  %v349_v40 = vld [vmem:[#allocation2 + $0x128] sm:$0xff]  ;;  %v335_v42 = vld [vmem:[#allocation2 + $0xb8] sm:$0xff]  ;;  %s878_s4 = scalar_lea.vmem %s1164_s27, 128  ;;  %p1217_p9 = scmp.ne.s32.totalorder %s1210_s19, 0 }
  0x3d   : > { %v348_v37 = vld [vmem:[#allocation2 + $0x120] sm:$0xff]  ;;  %v366_v43 = vld [vmem:[#allocation2 + $0x1b0] sm:$0xff]  ;;  %v367_v44 = vld [vmem:[#allocation2 + $0x1b8] sm:$0xff]  ;;  %723 = vmatpush3.bf16.msra.mxu0 %v722_v31  ;;  %v726_v45 = vpack.c.bf16 %v317_v36, %v316_v35  ;;  %v728_v47 = vpack.c.bf16 %v335_v42, %v334_v41  ;;  %v155_v41 = vlaneseq  ;;  %p879_p6 = scmp.ne.s32.totalorder %s1164_s27, %s878_s4  ;;  %s958_s13 = smov [#allocation5]  }
  0x3e   : > { %755 = vmatpush3.bf16.msra.mxu1 %v754_v32  ;;  %725 = vmatprep.subr.bf16.mxu0 %v724_v33  ;;  %v758_v46 = vpack.c.bf16 %v349_v40, %v348_v37  ;;  %v318_v48 = vld [vmem:[#allocation2 + $0x30] sm:$0xff]  ;;  %v319_v49 = vld [vmem:[#allocation2 + $0x38] sm:$0xff]  ;;  %v760_v50 = vpack.c.bf16 %v367_v44, %v366_v43  ;;  %v336_v53 = vld [vmem:[#allocation2 + $0xc0] sm:$0xff]  ;;  %s882_s5 = sshll.u32 %s958_s13, 4  ;;  %s883_s5 = int_to_ptr.vmem [resolvable:$false] %s882_s5 }
  0x3f   : > { %844 = vset.pattern.permute.xlu1 %v951_v22  ;;  %842 = vset.pattern.permute.xlu0 %v952_v23  ;;  %v350_v51 = vld [vmem:[#allocation2 + $0x130] sm:$0xff]  ;;  %v351_v52 = vld [vmem:[#allocation2 + $0x138] sm:$0xff]  ;;  %v337_v55 = vld [vmem:[#allocation2 + $0xc8] sm:$0xff]  ;;  %v730_v59 = vpack.c.bf16 %v319_v49, %v318_v48  ;;  %v1072_v42 = vand.u32 127, %v155_v41  ;;  %v957_v48 = vmov 0.0   ;;  %p880_p10 = pnand %p879_p6, %p1217_p9  ;;  %s884_s6 = scalar_lea.vmem %s883_s5, 256 }
  0x40   : > { %218 = vperm.xlu1 %844, %v1062_v2   ;;  %180 = vperm.xlu0 %842, %v1062_v2   ;;  %v368_v56 = vld [vmem:[#allocation2 + $0x1c0] sm:$0xff]  ;;  %v369_v57 = vld [vmem:[#allocation2 + $0x1c8] sm:$0xff]  ;;  %v762_v60 = vpack.c.bf16 %v351_v52, %v350_v51  ;;  %v732_v0 = vpack.c.bf16 %v337_v55, %v336_v53  ;;  %v338_v4 = vld [vmem:[#allocation2 + $0xd0] sm:$0xff]  ;;  %p885_p2 = scmp.lt.s32.totalorder %s1164_s27, %s883_s5  ;;  %p886_p3 = scmp.lt.s32.totalorder %s884_s6, %s878_s4 }
  0x41   : > { %757 = vmatprep.subr.bf16.mxu1 %v756_v34  ;;  %727 = vmatpush3.bf16.msra.mxu0 %v726_v45  ;;  %v320_v61 = vld [vmem:[#allocation2 + $0x40] sm:$0xff]  ;;  %v321_v62 = vld [vmem:[#allocation2 + $0x48] sm:$0xff]  ;;  %v764_v1 = vpack.c.bf16 %v369_v57, %v368_v56  ;;  %v339_v5 = vld [vmem:[#allocation2 + $0xd8] sm:$0xff]  ;;  %v1075_v43 = vadd.s32 128, %v1072_v42  ;;  %v1078_v44 = vadd.s32 256, %v1072_v42  ;;  %v1081_v45 = vadd.s32 384, %v1072_v42  ;;  %p881_p12 = pneg %p880_p10 }
  0x42   : > { %759 = vmatpush3.bf16.msra.mxu1 %v758_v46  ;;  %729 = vmatprep.subr.bf16.mxu0 %v728_v47  ;;  %v352_v63 = vld [vmem:[#allocation2 + $0x140] sm:$0xff]  ;;  %v353_v3 = vld [vmem:[#allocation2 + $0x148] sm:$0xff]  ;;  %v370_v6 = vld [vmem:[#allocation2 + $0x1d0] sm:$0xff]  ;;  %v734_v8 = vpack.c.bf16 %v321_v62, %v320_v61  ;;  %v736_v10 = vpack.c.bf16 %v339_v5, %v338_v4  ;;  %p887_p4 = por %p886_p3, %p885_p2 }
  0x43   : > { %761 = vmatprep.subr.bf16.mxu1 %v760_v50  ;;  %v371_v7 = vld [vmem:[#allocation2 + $0x1d8] sm:$0xff]  ;;  %v766_v9 = vpack.c.bf16 %v353_v3, %v352_v63  ;;  %v322_v11 = vld [vmem:[#allocation2 + $0x50] sm:$0xff]  ;;  %v340_v16 = vld [vmem:[#allocation2 + $0xe0] sm:$0xff] }
  0x44   : > { %845 = vset.pattern.permute.xlu1 %v953_v38  ;;  %846 = vset.pattern.permute.xlu0 %v954_v39  ;;  %v323_v12 = vld [vmem:[#allocation2 + $0x58] sm:$0xff]  ;;  %v354_v13 = vld [vmem:[#allocation2 + $0x150] sm:$0xff]  ;;  %v768_v14 = vpack.c.bf16 %v371_v7, %v370_v6  ;;  %v341_v17 = vld [vmem:[#allocation2 + $0xe8] sm:$0xff]  ;;  %p888_p7 = pnand %p887_p4, %p881_p12 }
  0x45   : > { %237 = vperm.xlu1 %845, %v1062_v2   ;;  %256 = vperm.xlu0 %846, %v1062_v2   ;;  %v355_v15 = vld [vmem:[#allocation2 + $0x158] sm:$0xff]  ;;  %v372_v18 = vld [vmem:[#allocation2 + $0x1e0] sm:$0xff]  ;;  %v373_v19 = vld [vmem:[#allocation2 + $0x1e8] sm:$0xff]  ;;  %v738_v20 = vpack.c.bf16 %v323_v12, %v322_v11 }
  0x46   : > { %731 = vmatpush3.bf16.msra.mxu0 %v730_v59  ;;  %763 = vmatpush3.bf16.msra.mxu1 %v762_v60  ;;  %v770_v21 = vpack.c.bf16 %v355_v15, %v354_v13  ;;  %v324_v22 = vld [vmem:[#allocation2 + $0x60] sm:$0xff]  ;;  %v325_v23 = vld [vmem:[#allocation2 + $0x68] sm:$0xff]  ;;  %v772_v25 = vpack.c.bf16 %v373_v19, %v372_v18  ;;  %v342_v27 = vld [vmem:[#allocation2 + $0xf0] sm:$0xff] }
  0x47   : > { %733 = vmatprep.subr.bf16.mxu0 %v732_v0  ;;  %765 = vmatprep.subr.bf16.mxu1 %v764_v1  ;;  %v356_v24 = vld [vmem:[#allocation2 + $0x160] sm:$0xff]  ;;  %v357_v26 = vld [vmem:[#allocation2 + $0x168] sm:$0xff]  ;;  %v343_v28 = vld [vmem:[#allocation2 + $0xf8] sm:$0xff]  ;;  %v742_v31 = vpack.c.bf16 %v325_v23, %v324_v22 }
  0x48   : > { %v374_v29 = vld [vmem:[#allocation2 + $0x1f0] sm:$0xff]  ;;  %v375_v30 = vld [vmem:[#allocation2 + $0x1f8] sm:$0xff]  ;;  %v774_v32 = vpack.c.bf16 %v357_v26, %v356_v24  ;;  %v744_v33 = vpack.c.bf16 %v343_v28, %v342_v27 }
  0x49   : > { %847 = vset.pattern.permute.xlu1 %v955_v54  ;;  %849 = vset.pattern.permute.xlu0 %v956_v58  ;;  %v326_v34 = vld [vmem:[#allocation2 + $0x70] sm:$0xff]  ;;  %v327_v35 = vld [vmem:[#allocation2 + $0x78] sm:$0xff]  ;;  %v776_v36 = vpack.c.bf16 %v375_v30, %v374_v29 }
  0x4a   : > { %275 = vperm.xlu1 %847, %v1062_v2   ;;  %735 = vmatpush3.bf16.msra.mxu0 %v734_v8  ;;  %v358_v37 = vld [vmem:[#allocation2 + $0x170] sm:$0xff]  ;;  %v359_v38 = vld [vmem:[#allocation2 + $0x178] sm:$0xff]  ;;  %v746_v39 = vpack.c.bf16 %v327_v35, %v326_v34 }
  0x4b   : > { %767 = vmatpush3.bf16.msra.mxu1 %v766_v9  ;;  %737 = vmatprep.subr.bf16.mxu0 %v736_v10  ;;  %v778_v40 = vpack.c.bf16 %v359_v38, %v358_v37 }
  0x4c   : > { %769 = vmatprep.subr.bf16.mxu1 %v768_v14 }
  0x4e   : > { %848 = vset.pattern.permute.xlu1 %v956_v58  ;;  %739 = vmatpush3.bf16.msra.mxu0 %v738_v20 }
  0x4f   : > { %294 = vperm.xlu1 %848, %v1062_v2   ;;  %v740_v2 = vpack.c.bf16 %v341_v17, %v340_v16  ;;  %771 = vmatpush3.bf16.msra.mxu1 %v770_v21 }
  0x50   : > { %773 = vmatprep.subr.bf16.mxu1 %v772_v25 }
  0x51   : > { %741 = vmatprep.subr.bf16.mxu0 %v740_v2 }
  0x52   : > { %743 = vmatpush3.bf16.msra.mxu0 %v742_v31 }
  0x53   : > { %775 = vmatpush3.bf16.msra.mxu1 %v774_v32  ;;  %745 = vmatprep.subr.bf16.mxu0 %v744_v33 }
  0x54   : > { %777 = vmatprep.subr.bf16.mxu1 %v776_v36 }
  0x56   : > { %747 = vmatpush3.bf16.msra.mxu0 %v746_v39 }
  0x57   : > { %779 = vmatpush3.bf16.msra.mxu1 %v778_v40 }
  0xba   : > { %v200_v46 = vpop.permute.xlu1 %199  ;;  %v162_v47 = vpop.permute.xlu0 %161 }
  0xbb   : > { %vm201_vm0 = vcmp.eq.s32.totalorder %v1072_v42, %v200_v46  ;;  %vm202_vm1 = vcmp.eq.s32.totalorder %v1075_v43, %v200_v46  ;;  %vm203_vm2 = vcmp.eq.s32.totalorder %v1078_v44, %v200_v46  ;;  %vm204_vm3 = vcmp.eq.s32.totalorder %v1081_v45, %v200_v46 }
  0xbc   : > { %vm163_vm4 = vcmp.eq.s32.totalorder %v1072_v42, %v162_v47  ;;  %vm164_vm5 = vcmp.eq.s32.totalorder %v1075_v43, %v162_v47  ;;  %vm165_vm6 = vcmp.eq.s32.totalorder %v1078_v44, %v162_v47  ;;  %vm166_vm7 = vcmp.eq.s32.totalorder %v1081_v45, %v162_v47 }
  0xbd   : > { %v618_v49 = vsel %vm201_vm0, 1.0, %v957_v48  ;;  %v619_v50 = vsel %vm202_vm1, 1.0, %v957_v48  ;;  %v620_v51 = vsel %vm203_vm2, 1.0, %v957_v48  ;;  %v621_v52 = vsel %vm204_vm3, 1.0, %v957_v48 }
  0xbe   : > { %v610_v55 = vsel %vm163_vm4, 1.0, %v957_v48  ;;  %v611_v56 = vsel %vm164_vm5, 1.0, %v957_v48  ;;  %v612_v57 = vsel %vm165_vm6, 1.0, %v957_v48  ;;  %v613_v58 = vsel %vm166_vm7, 1.0, %v957_v48 }
  0xbf   : > { %v219_v53 = vpop.permute.xlu1 %218  ;;  %v181_v54 = vpop.permute.xlu0 %180 }
  0xc0   : > { %vm220_vm8 = vcmp.eq.s32.totalorder %v1072_v42, %v219_v53  ;;  %vm221_vm9 = vcmp.eq.s32.totalorder %v1075_v43, %v219_v53  ;;  %vm222_vm10 = vcmp.eq.s32.totalorder %v1078_v44, %v219_v53  ;;  %vm223_vm11 = vcmp.eq.s32.totalorder %v1081_v45, %v219_v53 }
  0xc1   : > { %vm182_vm12 = vcmp.eq.s32.totalorder %v1072_v42, %v181_v54  ;;  %vm183_vm13 = vcmp.eq.s32.totalorder %v1075_v43, %v181_v54  ;;  %vm184_vm14 = vcmp.eq.s32.totalorder %v1078_v44, %v181_v54  ;;  %vm185_vm15 = vcmp.eq.s32.totalorder %v1081_v45, %v181_v54 }
  0xc2   : > { %v614_v59 = vsel %vm182_vm12, 1.0, %v957_v48  ;;  %v615_v60 = vsel %vm183_vm13, 1.0, %v957_v48  ;;  %v616_v61 = vsel %vm184_vm14, 1.0, %v957_v48  ;;  %v617_v62 = vsel %vm185_vm15, 1.0, %v957_v48 }
  0xc3   : > { %v194_v63 = vadd.f32 %v614_v59, %v610_v55  ;;  %v195_v0 = vadd.f32 %v615_v60, %v611_v56  ;;  %v196_v1 = vadd.f32 %v616_v61, %v612_v57  ;;  %v197_v3 = vadd.f32 %v617_v62, %v613_v58 }
  0xc4   : > { %v238_v4 = vpop.permute.xlu1 %237  ;;  %v622_v5 = vsel %vm220_vm8, 1.0, %v957_v48  ;;  %v623_v6 = vsel %vm221_vm9, 1.0, %v957_v48  ;;  %v257_v7 = vpop.permute.xlu0 %256  ;;  %v624_v8 = vsel %vm222_vm10, 1.0, %v957_v48  ;;  %v625_v23 = vsel %vm223_vm11, 1.0, %v957_v48 }
  0xc5   : > { %vm239_vm0 = vcmp.eq.s32.totalorder %v1072_v42, %v238_v4  ;;  %vm241_vm1 = vcmp.eq.s32.totalorder %v1078_v44, %v238_v4  ;;  %v213_v9 = vadd.f32 %v618_v49, %v194_v63  ;;  %v215_v10 = vadd.f32 %v620_v51, %v196_v1 }
  0xc6   : > { %vm240_vm2 = vcmp.eq.s32.totalorder %v1075_v43, %v238_v4  ;;  %v214_v11 = vadd.f32 %v619_v50, %v195_v0  ;;  %vm242_vm3 = vcmp.eq.s32.totalorder %v1081_v45, %v238_v4  ;;  %v626_v12 = vsel %vm239_vm0, 1.0, %v957_v48 }
  0xc7   : > { %v628_v13 = vsel %vm241_vm1, 1.0, %v957_v48  ;;  %v216_v14 = vadd.f32 %v621_v52, %v197_v3  ;;  %v232_v15 = vadd.f32 %v622_v5, %v213_v9  ;;  %v234_v16 = vadd.f32 %v624_v8, %v215_v10 }
  0xc8   : > { %vm258_vm4 = vcmp.eq.s32.totalorder %v1072_v42, %v257_v7  ;;  %v627_v17 = vsel %vm240_vm2, 1.0, %v957_v48  ;;  %vm259_vm5 = vcmp.eq.s32.totalorder %v1075_v43, %v257_v7  ;;  %vm260_vm6 = vcmp.eq.s32.totalorder %v1078_v44, %v257_v7 }
  0xc9   : > { %v630_v18 = vsel %vm258_vm4, 1.0, %v957_v48  ;;  %v276_v19 = vpop.permute.xlu1 %275  ;;  %v251_v20 = vadd.f32 %v626_v12, %v232_v15  ;;  %v253_v21 = vadd.f32 %v628_v13, %v234_v16  ;;  %vm261_vm7 = vcmp.eq.s32.totalorder %v1081_v45, %v257_v7 }
  0xca   : > { %v632_v2 = vsel %vm260_vm6, 1.0, %v957_v48  ;;  %vm277_vm8 = vcmp.eq.s32.totalorder %v1072_v42, %v276_v19  ;;  %vm279_vm9 = vcmp.eq.s32.totalorder %v1078_v44, %v276_v19  ;;  %v233_v22 = vadd.f32 %v623_v6, %v214_v11 }
  0xcb   : > { %vm278_vm10 = vcmp.eq.s32.totalorder %v1075_v43, %v276_v19  ;;  %v629_v24 = vsel %vm242_vm3, 1.0, %v957_v48  ;;  %v631_v25 = vsel %vm259_vm5, 1.0, %v957_v48  ;;  %v270_v26 = vadd.f32 %v630_v18, %v251_v20 }
  0xcc   : > { %v633_v27 = vsel %vm261_vm7, 1.0, %v957_v48  ;;  %v634_v28 = vsel %vm277_vm8, 1.0, %v957_v48  ;;  %v252_v29 = vadd.f32 %v627_v17, %v233_v22  ;;  %v235_v30 = vadd.f32 %v625_v23, %v216_v14 }
  0xcd   : > { %v272_v31 = vadd.f32 %v632_v2, %v253_v21  ;;  %v636_v32 = vsel %vm279_vm9, 1.0, %v957_v48  ;;  %v635_v34 = vsel %vm278_vm10, 1.0, %v957_v48  ;;  %vm280_vm11 = vcmp.eq.s32.totalorder %v1081_v45, %v276_v19 }
  0xce   : > { %v295_v33 = vpop.permute.xlu1 %294  ;;  %v271_v35 = vadd.f32 %v631_v25, %v252_v29  ;;  %v254_v38 = vadd.f32 %v629_v24, %v235_v30  ;;  %v289_v39 = vadd.f32 %v634_v28, %v270_v26  ;;  %v637_v41 = vsel %vm280_vm11, 1.0, %v957_v48 }
  0xcf   : > { %vm296_vm12 = vcmp.eq.s32.totalorder %v1072_v42, %v295_v33  ;;  %vm298_vm13 = vcmp.eq.s32.totalorder %v1078_v44, %v295_v33  ;;  %vm297_vm14 = vcmp.eq.s32.totalorder %v1075_v43, %v295_v33  ;;  %vm299_vm15 = vcmp.eq.s32.totalorder %v1081_v45, %v295_v33 }
  0xd0   : > { %v638_v36 = vsel %vm296_vm12, 1.0, %v957_v48  ;;  %v639_v37 = vsel %vm297_vm14, 1.0, %v957_v48  ;;  %v290_v40 = vadd.f32 %v635_v34, %v271_v35  ;;  %v640_v46 = vsel %vm298_vm13, 1.0, %v957_v48 }
  0xd1   : > { %v273_v42 = vadd.f32 %v633_v27, %v254_v38  ;;  %v308_v47 = vadd.f32 %v638_v36, %v289_v39  ;;  %v641_v49 = vsel %vm299_vm15, 1.0, %v957_v48  ;;  %v291_v43 = vadd.f32 %v636_v32, %v272_v31 }
  0xd2   : > { %v309_v44 = vadd.f32 %v639_v37, %v290_v40 }
  0xd3   : > { %v292_v50 = vadd.f32 %v637_v41, %v273_v42  ;;  %v310_v51 = vadd.f32 %v640_v46, %v291_v43 }
  0xd4   : > { %440 = vmatprep.mubr.f32.mxu0 %v309_v44 }
  0xd5   : > { %v311_v52 = vadd.f32 %v641_v49, %v292_v50  ;;  %441 = vmatmul.mubr.f32.vlgmr.msra.gmra.mrb[0].mxu0 %v308_v47 }
  0xd7   : > { %510 = vmatprep.mubr.f32.mxu1 %v311_v52 }
  0xd8   : > { %511 = vmatmul.mubr.f32.vlgmr.msra.gmra.mrb[0].mxu1 %v310_v51 }
 0x1a8   : > { %v678_v53 = vpop.f32.mrb[0].mxu0 }
 0x1a9   : > { %v679_v45 = vpop.f32.mrb[1].mxu0 }
 0x1aa   : > { %v680_v54 = vadd.f32 %v679_v45, %v678_v53 }
 0x1ab   : > { %v713_v55 = vpop.f32.mrb[0].mxu1 }
 0x1ac   : > { %v714_v56 = vpop.f32.mrb[1].mxu1 }
 0x1ad   : > { %v715_v48 = vadd.f32 %v714_v56, %v713_v55 }
 0x1af   : > { %v513_v57 = vadd.f32 %v715_v48, %v680_v54 }
 0x1b1   : > { %516 = vst [vmem:[%s149_s26] sm:$0xff] %v513_v57 }
 0x1b2   : > { %891 = shalt.err (!%p888_p7)
}
 0x1b3   : > { %s892_s7 = scalar_lea.hbm %s1162_s30, 128  ;;  %s896_s16 = scalar_lea.hbm %s1206_s2, 512 }
 0x1b4   : > { %p893_p8 = scmp.ne.s32.totalorder %s1162_s30, %s892_s7  ;;  %p897_p1 = scmp.lt.u32.totalorder %s1162_s30, %s1206_s2 }
 0x1b5   : > { %p898_p0 = scmp.lt.u32.totalorder %s896_s16, %s892_s7  ;;  %p900_p6 = scmp.lt.u32.totalorder %s892_s7, %s1162_s30 }
 0x1b6   : > { %p894_p11 = pnand %p893_p8, %p1217_p9 }
 0x1b7   : > { %p899_p5 = por %p898_p0, %p897_p1 }
 0x1b8   : > { %p895_p13 = pneg %p894_p11 }
 0x1b9   : > { %p901_p10 = por %p900_p6, %p899_p5 }
 0x1bb   : > { %p902_p12 = pnand %p901_p10, %p895_p13 }
 0x1bd   : > { %905 = shalt.err (!%p902_p12)
}
 0x1be   : > { %784 = dma.vmem_to_hbm [thread:$0]  (%p1217_p9), %s1164_s27, 128, %s1162_s30, %s518_s3  }
 0x1bf PF: > { %p796_p2 = scmp.ge.s32.totalorder %s944_s12, 2  ;;  %s543_s21 = sand.u32 1, %s932_s9  }
 0x1c0   : > { %p1218_p3 = scmp.ne.s32.totalorder %s1211_s20, 0  ;;  %s544_s23 = scalar_lea.sflag [#allocation4], %s543_s21 }
 0x1c2   : > { %p791_p4 = pnand %p796_p2, %p1218_p3 }
 0x1c4   : > { %927 = dma.done.wait (!%p791_p4), %s544_s23, 128  }
 0x1c5   : > { %929 = vsyncadd (!%p791_p4), %s544_s23, 4294967168  ;;  %p13_p7 = scmp.ge.s32.totalorder %s999_s15, 6   ;;  %s1219_s9 = smov %s936_s10 }
 0x1c6   : > { %s1220_s10 = smov %s940_s11  ;;  %s1221_s11 = smov %s1010_s18 }
 0x1c7   : > { %s1222_s12 = smov %s999_s15  ;;  %15 = sbr.rel (!%p13_p7) target bundleno = 4 (0x4), region = 68 }
 0x1ce   :  { %549 = vsyncpa [#allocation3], 1 }
 0x1cf   :  { %551 = vsyncpa [#allocation3 + $0x1], 1 }
 0x1d0   :  { %552 = vsyncpa [#allocation4], 1 }
 0x1d1   :  { %554 = vsyncpa [#allocation4 + $0x1], 1 }

</bundles_post_ra>
